<compile_context>
chip_gen: v6e
topology: v6e:2x2x1
jax: 0.10.0
libtpu: 0.0.40
codegen_flags: <defaults>
</compile_context>

<pallas_src>
import functools

import jax
import jax.numpy as jnp
from jax.experimental import pallas as pl
from jax.experimental.pallas import tpu as pltpu

_LANE = 128  # vreg lane width


def _round_up(n, m):
    return ((n + m - 1) // m) * m


def _cdiv(a, b):
    return -(-a // b)


def _sublane_multiple(compute_dtype):
    # 32-bit packs 8 rows/vreg, bf16 packs 16, int8 would pack 32.
    itemsize = jnp.dtype(compute_dtype).itemsize
    return 8 * max(1, 4 // itemsize)


def _qnet_kernel(x_ref, w1_ref, b1_ref, w2_ref, b2_ref, o_ref, *,
                 out_features, compute_dtype):
    # x_ref:  (BM, IN)  f32      w1_ref: (IN, Hp)  compute_dtype
    # b1_ref: (1, Hp)   f32      w2_ref: (Hp, Op)  compute_dtype
    # b2_ref: (1, Op)   f32      o_ref:  (BM, out_features) f32
    #
    # Cast x to the MXU compute dtype in-kernel (free under the MXU) so the
    # HBM read of x stays in its original dtype with no extra wrapper pass.
    x = x_ref[...].astype(compute_dtype)
    h = jnp.dot(x, w1_ref[...], preferred_element_type=jnp.float32)
    h = jnp.maximum(h + b1_ref[...], 0.0)          # f32 bias + ReLU (v5e-safe)
    y = jnp.dot(h.astype(w2_ref.dtype), w2_ref[...],
                preferred_element_type=jnp.float32)
    y = y + b2_ref[...]
    # Store only the real output columns: the HBM write is out_features wide
    # (e.g. 16 B/row) instead of a 128-lane padded tile (512 B/row).
    o_ref[...] = y[:, :out_features].astype(o_ref.dtype)


def linear_qnet_forward(x, w1, b1, w2, b2, *,
                        compute_dtype=jnp.float32, block_batch=1024):
    """Fused two-layer MLP (Linear -> ReLU -> Linear).

    x : (batch, in_features)      float32
    w1: (in_features, hidden)     float32  (transposed vs torch Linear weight)
    b1: (1, hidden)               float32
    w2: (hidden, out_features)    float32  (transposed vs torch Linear weight)
    b2: (1, out_features)         float32
    compute_dtype: dtype fed to the MXU; bfloat16 is valid on v5e/v6e/v7x
                   (accumulation and bias/ReLU remain f32).
    """
    batch, in_f = x.shape
    hidden = w1.shape[1]
    out_f = w2.shape[1]

    # Lane-dense padding of hidden / output feature dims for the compute tiles
    # only.  K (= in_f) is intentionally left unpadded.
    h_pad = _round_up(max(hidden, _LANE), _LANE)
    o_pad = _round_up(max(out_f, _LANE), _LANE)

    # Batch tiling: bound padding by the sublane multiple and use >= 2 blocks
    # whenever the batch allows it (v7x has two TensorCores; on v5e/v6e the
    # extra grid step costs ~0.35 us).
    sub = _sublane_multiple(compute_dtype)
    n_target = max(1, _cdiv(batch, block_batch))
    if batch >= 2 * sub:
        n_target = max(n_target, 2)
    bm = _round_up(_cdiv(batch, n_target), sub)
    n_blocks = _cdiv(batch, bm)
    b_pad = n_blocks * bm

    # Zero-pad (padded lanes/rows contribute exactly 0 through both layers).
    xp = jnp.pad(x, ((0, b_pad - batch), (0, 0)))                      # stays f32
    w1p = jnp.pad(w1, ((0, 0), (0, h_pad - hidden))).astype(compute_dtype)
    b1p = jnp.pad(b1, ((0, 0), (0, h_pad - hidden))).astype(jnp.float32)
    w2p = jnp.pad(w2, ((0, h_pad - hidden), (0, o_pad - out_f))).astype(compute_dtype)
    b2p = jnp.pad(b2, ((0, 0), (0, o_pad - out_f))).astype(jnp.float32)

    vmem = pltpu.MemorySpace.VMEM
    # Streamed per-grid-step tiles (double-buffered by the Pallas pipeline).
    x_spec = pl.BlockSpec((bm, in_f), lambda i: (i, 0), memory_space=vmem)
    o_spec = pl.BlockSpec((bm, out_f), lambda i: (i, 0), memory_space=vmem)
    # VMEM-resident parameters: constant index_map -> DMA'd once, reused.
    # (Single-buffering them via pipeline_mode is a further v7x VMEM saving;
    #  left at the default here since the footprint is already tiny.)
    w1_spec = pl.BlockSpec((in_f, h_pad), lambda i: (0, 0), memory_space=vmem)
    b1_spec = pl.BlockSpec((1, h_pad), lambda i: (0, 0), memory_space=vmem)
    w2_spec = pl.BlockSpec((h_pad, o_pad), lambda i: (0, 0), memory_space=vmem)
    b2_spec = pl.BlockSpec((1, o_pad), lambda i: (0, 0), memory_space=vmem)

    # VMEM budget from actual tile sizes (double-buffered I/O + f32
    # intermediates), with headroom; well inside v7x's 64 MiB.
    param_bytes = (w1p.size * w1p.dtype.itemsize + b1p.size * b1p.dtype.itemsize
                   + w2p.size * w2p.dtype.itemsize + b2p.size * b2p.dtype.itemsize)
    stream_bytes = bm * in_f * xp.dtype.itemsize + bm * out_f * 4
    interm_bytes = bm * (h_pad + o_pad) * 4
    vmem_limit = int(min(max(4 * (param_bytes + stream_bytes + interm_bytes),
                             8 * 1024 * 1024),
                         64 * 1024 * 1024))

    bytes_accessed = (xp.size * xp.dtype.itemsize + param_bytes
                      + b_pad * out_f * 4)
    flops = 2 * b_pad * in_f * h_pad + 2 * b_pad * h_pad * o_pad

    kernel = functools.partial(_qnet_kernel, out_features=out_f,
                               compute_dtype=jnp.dtype(compute_dtype))

    out = pl.pallas_call(
        kernel,
        out_shape=jax.ShapeDtypeStruct((b_pad, out_f), jnp.float32),
        grid=(n_blocks,),
        in_specs=[x_spec, w1_spec, b1_spec, w2_spec, b2_spec],
        out_specs=o_spec,
        compiler_params=pltpu.CompilerParams(
            dimension_semantics=("parallel",),   # batch rows are independent
            vmem_limit_bytes=vmem_limit,
        ),
        cost_estimate=pl.CostEstimate(
            flops=flops, transcendentals=0, bytes_accessed=bytes_accessed),
    )(xp, w1p, b1p, w2p, b2p)

    # Only the batch-row trim remains; skipped when there is no batch padding.
    return out if b_pad == batch else out[:batch]


def init_params(key, input_size, hidden_size, output_size):
    """Deterministic init mimicking torch.nn.Linear (uniform +-1/sqrt(fan_in)).
    Weights are stored transposed: (in_features, out_features)."""
    k1, k2, k3, k4 = jax.random.split(key, 4)
    bound1 = 1.0 / jnp.sqrt(input_size)
    bound2 = 1.0 / jnp.sqrt(hidden_size)
    w1 = jax.random.uniform(k1, (input_size, hidden_size), jnp.float32, -bound1, bound1)
    b1 = jax.random.uniform(k2, (1, hidden_size), jnp.float32, -bound1, bound1)
    w2 = jax.random.uniform(k3, (hidden_size, output_size), jnp.float32, -bound2, bound2)
    b2 = jax.random.uniform(k4, (1, output_size), jnp.float32, -bound2, bound2)
    return w1, b1, w2, b2


# TODO(synk): Linear_QNet.save() (torch.save of the state_dict) is file I/O,
# not a forward-pass op; intentionally not implemented as a kernel.

if __name__ == "__main__":
    # Small shapes consistent with Linear_QNet(input_size, hidden_size, output_size)
    batch, input_size, hidden_size, output_size = 8, 16, 32, 4

    key = jax.random.PRNGKey(0)
    kx, kp = jax.random.split(key)
    x = jax.random.normal(kx, (batch, input_size), jnp.float32)
    w1, b1, w2, b2 = init_params(kp, input_size, hidden_size, output_size)

    # --- f32 path (exact vs reference) ---
    fwd_f32 = jax.jit(lambda *a: linear_qnet_forward(*a, compute_dtype=jnp.float32))
    out = jax.block_until_ready(fwd_f32(x, w1, b1, w2, b2))
    ref = jnp.maximum(x @ w1 + b1, 0.0) @ w2 + b2
    assert out.shape == (batch, output_size)
    assert jnp.allclose(out, ref, atol=1e-5, rtol=1e-5)

    # --- ragged batch (exercises sublane padding + batch-row trim) ---
    x13 = jax.random.normal(kx, (13, input_size), jnp.float32)
    out13 = jax.block_until_ready(fwd_f32(x13, w1, b1, w2, b2))
    ref13 = jnp.maximum(x13 @ w1 + b1, 0.0) @ w2 + b2
    assert out13.shape == (13, output_size)
    assert jnp.allclose(out13, ref13, atol=1e-5, rtol=1e-5)

    # --- bf16 MXU path (valid on v5e/v6e/v7x; x cast in-kernel) ---
    fwd_bf16 = jax.jit(lambda *a: linear_qnet_forward(*a, compute_dtype=jnp.bfloat16))
    out_bf = jax.block_until_ready(fwd_bf16(x, w1, b1, w2, b2))
    xb = x.astype(jnp.bfloat16)
    w1b = w1.astype(jnp.bfloat16)
    w2b = w2.astype(jnp.bfloat16)
    hb = jnp.maximum(
        jnp.dot(xb, w1b, preferred_element_type=jnp.float32) + b1, 0.0)
    ref_bf = jnp.dot(hb.astype(jnp.bfloat16), w2b,
                     preferred_element_type=jnp.float32) + b2
    assert out_bf.shape == (batch, output_size)
    assert jnp.allclose(out_bf, ref_bf, atol=1e-2, rtol=1e-2)

    print("KERNEL_OK")
</pallas_src>

<mosaic_0001>
module attributes {stable_mosaic.version = 11 : i64} {
  func.func @_qnet_kernel(%arg0: i32, %arg1: memref<8x16xf32, #tpu.memory_space<vmem>>, %arg2: memref<16x128xf32, #tpu.memory_space<vmem>>, %arg3: memref<1x128xf32, #tpu.memory_space<vmem>>, %arg4: memref<128x128xf32, #tpu.memory_space<vmem>>, %arg5: memref<1x128xf32, #tpu.memory_space<vmem>>, %arg6: memref<8x4xf32, #tpu.memory_space<vmem>>) attributes {dimension_semantics = [#tpu.dimension_semantics<parallel>], iteration_bounds = array<i64: 1>, scalar_prefetch = 0 : i64, scratch_operands = 0 : i64, tpu.core_type = #tpu.core_type<tc>, window_params = [{transform_indices = @transform_0, window_bounds = array<i64: 8, 16>}, {pipeline_mode = #tpu.pipeline_mode<synchronous>, transform_indices = @transform_1, window_bounds = array<i64: 16, 128>}, {pipeline_mode = #tpu.pipeline_mode<synchronous>, transform_indices = @transform_2, window_bounds = array<i64: 1, 128>}, {pipeline_mode = #tpu.pipeline_mode<synchronous>, transform_indices = @transform_3, window_bounds = array<i64: 128, 128>}, {pipeline_mode = #tpu.pipeline_mode<synchronous>, transform_indices = @transform_4, window_bounds = array<i64: 1, 128>}, {transform_indices = @transform_5, window_bounds = array<i64: 8, 4>}]} {
    %c0 = arith.constant 0 : index
    %c0_0 = arith.constant 0 : index
    %0 = vector.load %arg1[%c0, %c0_0] : memref<8x16xf32, #tpu.memory_space<vmem>>, vector<8x16xf32>
    %c0_1 = arith.constant 0 : index
    %c0_2 = arith.constant 0 : index
    %1 = vector.load %arg2[%c0_1, %c0_2] : memref<16x128xf32, #tpu.memory_space<vmem>>, vector<16x128xf32>
    %cst = arith.constant dense<0.000000e+00> : vector<8x128xf32>
    %2 = tpu.matmul %0, %1, %cst {dimension_numbers = #tpu.dot_dimension_numbers<[1], [0], [0], [1], [0, 0, 1, 1], [], []>} : vector<8x16xf32>, vector<16x128xf32>, vector<8x128xf32> -> vector<8x128xf32>
    %c0_3 = arith.constant 0 : index
    %c0_4 = arith.constant 0 : index
    %3 = vector.load %arg3[%c0_3, %c0_4] : memref<1x128xf32, #tpu.memory_space<vmem>>, vector<1x128xf32>
    %4 = vector.broadcast %3 : vector<1x128xf32> to vector<8x128xf32>
    %5 = arith.addf %2, %4 : vector<8x128xf32>
    %cst_5 = arith.constant 0.000000e+00 : f32
    %6 = vector.broadcast %cst_5 : f32 to vector<8x128xf32>
    %7 = arith.maximumf %5, %6 : vector<8x128xf32>
    %c0_6 = arith.constant 0 : index
    %c0_7 = arith.constant 0 : index
    %8 = vector.load %arg4[%c0_6, %c0_7] : memref<128x128xf32, #tpu.memory_space<vmem>>, vector<128x128xf32>
    %cst_8 = arith.constant dense<0.000000e+00> : vector<8x128xf32>
    %9 = tpu.matmul %7, %8, %cst_8 {dimension_numbers = #tpu.dot_dimension_numbers<[1], [0], [0], [1], [0, 0, 1, 1], [], []>} : vector<8x128xf32>, vector<128x128xf32>, vector<8x128xf32> -> vector<8x128xf32>
    %c0_9 = arith.constant 0 : index
    %c0_10 = arith.constant 0 : index
    %10 = vector.load %arg5[%c0_9, %c0_10] : memref<1x128xf32, #tpu.memory_space<vmem>>, vector<1x128xf32>
    %11 = vector.broadcast %10 : vector<1x128xf32> to vector<8x128xf32>
    %12 = arith.addf %9, %11 : vector<8x128xf32>
    %13 = vector.extract_strided_slice %12 {offsets = [0, 0], sizes = [8, 4], strides = [1, 1]} : vector<8x128xf32> to vector<8x4xf32>
    %c0_11 = arith.constant 0 : index
    %c0_12 = arith.constant 0 : index
    %14 = vector.load %arg6[%c0_11, %c0_12] : memref<8x4xf32, #tpu.memory_space<vmem>>, vector<8x4xf32>
    tpu.vector_store %arg6[%c0_11, %c0_12], %13 {strides = array<i32>} : memref<8x4xf32, #tpu.memory_space<vmem>>, vector<8x4xf32>,
    return
  }
  func.func @transform_0(%arg0: i32) -> (i32, i32) {
    %c0_i32 = arith.constant 0 : i32
    %c0_i32_0 = arith.constant 0 : i32
    return %arg0, %c0_i32 : i32, i32
  }
  func.func @transform_1(%arg0: i32) -> (i32, i32) {
    %c0_i32 = arith.constant 0 : i32
    %c0_i32_0 = arith.constant 0 : i32
    %c0_i32_1 = arith.constant 0 : i32
    return %c0_i32, %c0_i32_0 : i32, i32
  }
  func.func @transform_2(%arg0: i32) -> (i32, i32) {
    %c0_i32 = arith.constant 0 : i32
    %c0_i32_0 = arith.constant 0 : i32
    %c0_i32_1 = arith.constant 0 : i32
    return %c0_i32, %c0_i32_0 : i32, i32
  }
  func.func @transform_3(%arg0: i32) -> (i32, i32) {
    %c0_i32 = arith.constant 0 : i32
    %c0_i32_0 = arith.constant 0 : i32
    %c0_i32_1 = arith.constant 0 : i32
    return %c0_i32, %c0_i32_0 : i32, i32
  }
  func.func @transform_4(%arg0: i32) -> (i32, i32) {
    %c0_i32 = arith.constant 0 : i32
    %c0_i32_0 = arith.constant 0 : i32
    %c0_i32_1 = arith.constant 0 : i32
    return %c0_i32, %c0_i32_0 : i32, i32
  }
  func.func @transform_5(%arg0: i32) -> (i32, i32) {
    %c0_i32 = arith.constant 0 : i32
    %c0_i32_0 = arith.constant 0 : i32
    return %arg0, %c0_i32 : i32, i32
  }
}

</mosaic_0001>

<bundles_post_ra>
// kernel: _lambda_.1
= control target key start
LH: loop header
LB: loop body
LE: loop exit
PB: predicated region body
PF: predicated region fallthrough
CT: control target
= control target key end

     0   :  { %v271_v0 = vmov 0.0   ;;  %vm272_vm0 = vmmov 0   ;;  %vm30_vm1 = vcmask 130048   ;;  %vm198_vm2 = vcmask 31744   ;;  %s371_s1 = inlined_call_operand.vmem [shape: f32[16,128], index: 1, kind: input, shape index: {}]   ;;  %s372_s0 = inlined_call_operand.vmem [shape: f32[8,16], index: 0, kind: input, shape index: {}]   ;;  %s373_s3 = inlined_call_operand.vmem [shape: f32[128,128], index: 3, kind: input, shape index: {}]   ;;  %s374_s2 = inlined_call_operand.vmem [shape: f32[1,128], index: 2, kind: input, shape index: {}]   ;;  %s375_s4 = inlined_call_operand.vmem [shape: f32[1,128], index: 4, kind: input, shape index: {}]   ;;  %s376_s5 = inlined_call_operand.vmem [shape: f32[8,4], index: 5, kind: output, shape index: {}]  }
   0x1   :  { %227 = vmatprep.subr.mxu0 %v271_v0  ;;  %v22_v1 = vld [vmem:[%s371_s1 + $0x8] sm:$0xff]  ;;  %v21_v2 = vld [vmem:[%s371_s1] sm:$0xff]  ;;  %231 = vmatprep.mubr.msk.f32.mxu0 %vm272_vm0, %v271_v0  ;;  %v120_v4 = vld [vmem:[%s373_s3 + $0x78] sm:$0xff] }
   0x2   :  { %228 = vmatpush3.msra.mxu0 %v22_v1  ;;  %v20_v3 = vld [vmem:[%s372_s0] sm:$0xff]  ;;  %234 = vmatprep.subr.mxu1 %v271_v0  ;;  %v119_v5 = vld [vmem:[%s373_s3 + $0x70] sm:$0xff]  ;;  %v118_v6 = vld [vmem:[%s373_s3 + $0x68] sm:$0xff] }
   0x3   :  { %229 = vmatprep.subr.mxu0 %v271_v0  ;;  %235 = vmatpush3.msra.mxu1 %v120_v4  ;;  %v117_v7 = vld [vmem:[%s373_s3 + $0x60] sm:$0xff]  ;;  %v116_v8 = vld [vmem:[%s373_s3 + $0x58] sm:$0xff]  ;;  %v115_v9 = vld [vmem:[%s373_s3 + $0x50] sm:$0xff] }
   0x4   :  { %230 = vmatpush3.msra.mxu0 %v21_v2  ;;  %236 = vmatprep.subr.mxu1 %v271_v0  ;;  %v114_v10 = vld [vmem:[%s373_s3 + $0x48] sm:$0xff]  ;;  %v113_v11 = vld [vmem:[%s373_s3 + $0x40] sm:$0xff]  ;;  %v112_v12 = vld [vmem:[%s373_s3 + $0x38] sm:$0xff] }
   0x5   :  { %232 = vmatmul.mubr.msk.f32.vlgmr.msra.gmra.mxu0 %vm30_vm1, %v20_v3  ;;  %237 = vmatpush3.msra.mxu1 %v119_v5  ;;  %v111_v13 = vld [vmem:[%s373_s3 + $0x30] sm:$0xff]  ;;  %v110_v14 = vld [vmem:[%s373_s3 + $0x28] sm:$0xff]  ;;  %v109_v15 = vld [vmem:[%s373_s3 + $0x20] sm:$0xff] }
   0x6   :  { %238 = vmatprep.subr.mxu1 %v271_v0  ;;  %266 = vmatprep.mubr.msk.f32.mxu1 %vm272_vm0, %v271_v0  ;;  %v108_v16 = vld [vmem:[%s373_s3 + $0x18] sm:$0xff]  ;;  %v107_v17 = vld [vmem:[%s373_s3 + $0x10] sm:$0xff]  ;;  %v106_v18 = vld [vmem:[%s373_s3 + $0x8] sm:$0xff] }
   0x7   :  { %239 = vmatpush3.msra.mxu1 %v118_v6  ;;  %v105_v19 = vld [vmem:[%s373_s3] sm:$0xff] }
   0x8   :  { %240 = vmatprep.subr.mxu1 %v271_v0  ;;  %v204_v20 = vld [vmem:[%s374_s2] ss:$0 sm:$0xff] }
   0x9   :  { %241 = vmatpush3.msra.mxu1 %v117_v7  ;;  %v206_v25 = vld [vmem:[%s375_s4] ss:$0 sm:$0xff] }
   0xa   :  { %242 = vmatprep.subr.mxu1 %v271_v0 }
   0xb   :  { %243 = vmatpush3.msra.mxu1 %v116_v8 }
   0xc   :  { %244 = vmatprep.subr.mxu1 %v271_v0 }
   0xd   :  { %245 = vmatpush3.msra.mxu1 %v115_v9 }
   0xe   :  { %246 = vmatprep.subr.mxu1 %v271_v0 }
   0xf   :  { %247 = vmatpush3.msra.mxu1 %v114_v10 }
  0x10   :  { %248 = vmatprep.subr.mxu1 %v271_v0 }
  0x11   :  { %249 = vmatpush3.msra.mxu1 %v113_v11 }
  0x12   :  { %250 = vmatprep.subr.mxu1 %v271_v0 }
  0x13   :  { %251 = vmatpush3.msra.mxu1 %v112_v12 }
  0x14   :  { %252 = vmatprep.subr.mxu1 %v271_v0 }
  0x15   :  { %253 = vmatpush3.msra.mxu1 %v111_v13 }
  0x16   :  { %254 = vmatprep.subr.mxu1 %v271_v0 }
  0x17   :  { %255 = vmatpush3.msra.mxu1 %v110_v14 }
  0x18   :  { %256 = vmatprep.subr.mxu1 %v271_v0 }
  0x19   :  { %257 = vmatpush3.msra.mxu1 %v109_v15 }
  0x1a   :  { %258 = vmatprep.subr.mxu1 %v271_v0 }
  0x1b   :  { %259 = vmatpush3.msra.mxu1 %v108_v16 }
  0x1c   :  { %260 = vmatprep.subr.mxu1 %v271_v0 }
  0x1d   :  { %261 = vmatpush3.msra.mxu1 %v107_v17 }
  0x1e   :  { %262 = vmatprep.subr.mxu1 %v271_v0 }
  0x1f   :  { %263 = vmatpush3.msra.mxu1 %v106_v18 }
  0x20   :  { %264 = vmatprep.subr.mxu1 %v271_v0 }
  0x21   :  { %265 = vmatpush3.msra.mxu1 %v105_v19 }
  0xc5   :  { %v100_v21 = vpop.f32.mrf.mxu0 }
  0xc6   :  { %v101_v22 = vadd.f32 %v204_v20, %v100_v21 }
  0xc7   :  { %v233_v23 = vpop.f32.mrf.mxu0 }
  0xc8   :  { %v104_v24 = vmax.f32 %v101_v22, 0.0 }
  0xca   :  { %267 = vmatmul.mubr.f32.vlgmr.msra.gmra.mxu1 %v104_v24 }
 0x18a   :  { %v194_v26 = vpop.f32.mrf.mxu1 }
 0x18b   :  { %v195_v27 = vadd.f32 %v206_v25, %v194_v26 }
 0x18c   :  { %v268_v28 = vpop.f32.mrf.mxu1 }
 0x18d   :  { %199 = vst.msk [vmem:[%s376_s5] sm:$0xff] %vm198_vm2, %v195_v27 }

</bundles_post_ra>
